<compile_context>
chip_gen: v5e
topology: v5e:2x2
jax: 0.10.0
libtpu: 0.0.40
codegen_flags: <defaults>
</compile_context>

<pallas_src>
import functools

import jax
import jax.numpy as jnp
from jax import lax
from jax.experimental import pallas as pl
from jax.experimental.pallas import tpu as pltpu


def _unet_block_kernel(x_ref, w1_ref, b1_ref, w2_ref, b2_ref, wi_ref, bi_ref,
                       o_ref, *, H, d, slope):
    """One batch-block per grid step, everything lane-dense.

    x_ref  : (B*H, W*Cin)       f32   input rows (B images stacked along sublanes)
    w1_ref : (3*W*Cin, W*Cout)  bf16  conv_1 K-folded structured weight
    b1_ref : (1, W*Cout)        f32   conv_1 bias tiled per pixel
    w2_ref : (3*W*Cout, W*Cout) bf16  conv_2 K-folded structured weight
    b2_ref : (1, W*Cout)        f32
    wi_ref : (W*Cin, W*Cout)    bf16  1x1 identity conv as block-diagonal weight
    bi_ref : (1, W*Cout)        f32
    o_ref  : (B*H, W*Cout)      f32
    """
    M = x_ref.shape[0]                     # B*H rows
    x = x_ref[...]                         # (M, W*Cin) f32

    # Row index within each image (images are stacked back-to-back along M).
    row = lax.broadcasted_iota(jnp.int32, (M, 1), 0) % H
    up_ok = row >= d                       # x[r - d] stays inside the same image
    dn_ok = row < (H - d)                  # x[r + d] stays inside the same image

    def leaky(v):                          # f32 VPU elementwise (v5e-safe)
        return jnp.where(v >= 0, v, slope * v)

    def im2row(v):
        # (M, C) f32 -> (M, 3*C) bf16: lane-concat of the three ki-shifted views,
        # so each dilated 3x3 conv becomes a single K-folded MXU matmul.
        # pltpu.roll follows jnp.roll semantics: roll(v, s)[r] = v[(r - s) % M];
        # rows whose source would cross an image boundary (or the wrap-around)
        # are zeroed by the boundary masks, implementing 'same' padding along H.
        zeros = jnp.zeros_like(v)
        up = jnp.where(up_ok, pltpu.roll(v, d, axis=0), zeros)        # v[r - d]
        dn = jnp.where(dn_ok, pltpu.roll(v, M - d, axis=0), zeros)    # v[r + d]
        return jnp.concatenate([up, v, dn], axis=-1).astype(jnp.bfloat16)

    # conv_1 (dilated 3x3, 'same') + LeakyReLU: one bf16 MXU matmul, f32 acc.
    mid = jnp.dot(im2row(x), w1_ref[...],
                  preferred_element_type=jnp.float32) + b1_ref[...]
    mid = leaky(mid)

    # conv_2 (dilated 3x3, 'same') + LeakyReLU.
    out = jnp.dot(im2row(mid), w2_ref[...],
                  preferred_element_type=jnp.float32) + b2_ref[...]
    out = leaky(out)

    # identity 1x1 conv + residual add.
    out = out + jnp.dot(x.astype(jnp.bfloat16), wi_ref[...],
                        preferred_element_type=jnp.float32) + bi_ref[...]
    o_ref[...] = out.astype(o_ref.dtype)


def _conv_weight_as_matmul(w_hwio, W, d):
    """HWIO (3, 3, Cin, Cout) conv weight -> (3*W*Cin, W*Cout) structured weight.

    Row ki*(W*Cin) + p*Cin + c pairs with column p*Cin + c of the ki-shifted
    input view; column j*Cout + o is output pixel j / channel o:
        big[ki*W*Cin + p*Cin + c, j*Cout + o] = w[ki, kj, c, o],  p = j + (kj-1)*d
    Source columns outside [0, W) stay zero, folding the 'same' padding along W
    into the matmul.  NOTE: memory is 3*(W*Cin)*(W*Cout) and the matmul does
    ~W/3x redundant MACs — only sensible for small W (W=16 here).
    """
    kh, kw, cin, cout = w_hwio.shape
    w = w_hwio.astype(jnp.float32)
    j = jnp.arange(W)
    p = jnp.arange(W)
    planes = []
    for ki in range(kh):
        acc = jnp.zeros((W, cin, W, cout), jnp.float32)
        for kj in range(kw):
            src = j + (kj - kw // 2) * d            # input col feeding each output col
            valid = (src >= 0) & (src < W)
            sel = ((p[:, None] == src[None, :]) & valid[None, :]).astype(jnp.float32)
            acc = acc + jnp.einsum('pj,co->pcjo', sel, w[ki, kj])
        planes.append(acc.reshape(W * cin, W * cout))
    return jnp.concatenate(planes, axis=0)          # (3*W*Cin, W*Cout)


def unet_conv_block(x_nchw, params, *, d, relu_slope=0.1, batch_block=None):
    """Forward pass of UNetConvBlock. Input/output are NCHW (PyTorch layout)."""
    w1, b1, w2, b2, wi, bi = params
    N, Cin, H, W = x_nchw.shape
    Cout = w1.shape[-1]
    WCin, WCout = W * Cin, W * Cout

    # Batch block: default = whole batch in one grid step (best MXU fill at
    # small N).  For large N, pick B against the VMEM budget (v7x: 64 MiB
    # physical) and keep >= 2 grid steps so the "parallel" batch axis can
    # shard across v7x's two TensorCores.
    B = N if batch_block is None else batch_block

    # (8, 128) BlockSpec / unmasked-store preconditions.
    assert N % B == 0, "batch block must divide N"
    assert (B * H) % 8 == 0, "B*H must be a multiple of 8 (sublane tiling)"
    assert WCout % 128 == 0, "W*Cout must be a multiple of 128 (lane tiling)"

    # NCHW -> lane-dense rows (N*H, W*Cin).  (In a full model this layout
    # would be kept end-to-end instead of transposing around every block.)
    x_rows = (jnp.transpose(x_nchw, (0, 2, 3, 1))
              .reshape(N * H, WCin).astype(jnp.float32))

    # Structured weights (bf16 for the MXU), biases tiled per pixel (f32).
    w1_big = _conv_weight_as_matmul(w1, W, d).astype(jnp.bfloat16)
    w2_big = _conv_weight_as_matmul(w2, W, d).astype(jnp.bfloat16)
    wi_big = (jnp.einsum('pj,co->pcjo', jnp.eye(W, dtype=jnp.float32),
                         wi.astype(jnp.float32))
              .reshape(WCin, WCout).astype(jnp.bfloat16))
    b1_row = jnp.tile(b1.astype(jnp.float32), W).reshape(1, WCout)
    b2_row = jnp.tile(b2.astype(jnp.float32), W).reshape(1, WCout)
    bi_row = jnp.tile(bi.astype(jnp.float32), W).reshape(1, WCout)

    kernel = functools.partial(_unet_block_kernel, H=H, d=d, slope=relu_slope)

    out_rows = pl.pallas_call(
        kernel,
        out_shape=jax.ShapeDtypeStruct((N * H, WCout), jnp.float32),
        grid_spec=pltpu.PrefetchScalarGridSpec(
            num_scalar_prefetch=0,
            grid=(N // B,),
            in_specs=[
                pl.BlockSpec((B * H, WCin), lambda n: (n, 0)),
                # Constant index maps -> weights/biases DMA'd once.
                pl.BlockSpec((3 * WCin, WCout), lambda n: (0, 0)),
                pl.BlockSpec((1, WCout), lambda n: (0, 0)),
                pl.BlockSpec((3 * WCout, WCout), lambda n: (0, 0)),
                pl.BlockSpec((1, WCout), lambda n: (0, 0)),
                pl.BlockSpec((WCin, WCout), lambda n: (0, 0)),
                pl.BlockSpec((1, WCout), lambda n: (0, 0)),
            ],
            out_specs=pl.BlockSpec((B * H, WCout), lambda n: (n, 0)),
        ),
        compiler_params=pltpu.CompilerParams(
            dimension_semantics=("parallel",),      # batch blocks independent
            vmem_limit_bytes=32 * 1024 * 1024,
        ),
    )(x_rows, w1_big, b1_row, w2_big, b2_row, wi_big, bi_row)

    # (N*H, W*Cout) -> NCHW
    return jnp.transpose(out_rows.reshape(N, H, W, Cout), (0, 3, 1, 2))


def _reference(x_nchw, params, *, d, relu_slope=0.1, match_bf16=False):
    """Pure-JAX reference (NHWC lax convs).  With match_bf16=True the matmul
    operands are rounded to bf16 exactly like the kernel's MXU path (f32 acc),
    so the comparison isolates structural errors from bf16 quantisation."""
    w1, b1, w2, b2, wi, bi = params
    if match_bf16:
        q = lambda a: a.astype(jnp.bfloat16).astype(jnp.float32)
    else:
        q = lambda a: a.astype(jnp.float32)
    x = q(jnp.transpose(x_nchw, (0, 2, 3, 1)).astype(jnp.float32))
    dn = ('NHWC', 'HWIO', 'NHWC')
    prec = lax.Precision.HIGHEST

    def leaky(v):
        return jnp.where(v >= 0, v, relu_slope * v)

    out = lax.conv_general_dilated(x, q(w1), (1, 1), [(d, d), (d, d)],
                                   rhs_dilation=(d, d), dimension_numbers=dn,
                                   precision=prec) + b1
    out = leaky(out)
    out = lax.conv_general_dilated(q(out), q(w2), (1, 1), [(d, d), (d, d)],
                                   rhs_dilation=(d, d), dimension_numbers=dn,
                                   precision=prec) + b2
    out = leaky(out)
    ident = lax.conv_general_dilated(x, q(wi.reshape(1, 1, *wi.shape)), (1, 1),
                                     [(0, 0), (0, 0)], dimension_numbers=dn,
                                     precision=prec) + bi
    return jnp.transpose(out + ident, (0, 3, 1, 2))


if __name__ == "__main__":
    # Small shapes consistent with the module: in_size=4, out_size=8, d=2.
    N, Cin, Cout, H, W, d = 2, 4, 8, 16, 16, 2
    key = jax.random.PRNGKey(0)
    kx, k1, k2, k3, k4, k5, k6 = jax.random.split(key, 7)

    x = jax.random.normal(kx, (N, Cin, H, W), dtype=jnp.float32)

    # Deterministic synthetic parameters (HWIO weight layout for convs).
    w1 = 0.1 * jax.random.normal(k1, (3, 3, Cin, Cout), dtype=jnp.float32)
    b1 = 0.1 * jax.random.normal(k2, (Cout,), dtype=jnp.float32)
    w2 = 0.1 * jax.random.normal(k3, (3, 3, Cout, Cout), dtype=jnp.float32)
    b2 = 0.1 * jax.random.normal(k4, (Cout,), dtype=jnp.float32)
    wi = 0.1 * jax.random.normal(k5, (Cin, Cout), dtype=jnp.float32)
    bi = 0.1 * jax.random.normal(k6, (Cout,), dtype=jnp.float32)
    params = (w1, b1, w2, b2, wi, bi)

    out = jax.block_until_ready(unet_conv_block(x, params, d=d, relu_slope=0.1))
    assert out.shape == (N, Cout, H, W)

    # Strict check against a reference that rounds the matmul operands to bf16
    # exactly like the kernel's MXU path (remaining diff = f32 summation order).
    ref = jax.block_until_ready(
        _reference(x, params, d=d, relu_slope=0.1, match_bf16=True))
    assert jnp.max(jnp.abs(out - ref)) < 2e-3, "mismatch vs bf16-matched reference"

    print("KERNEL_OK")
</pallas_src>

<mosaic_0001>
module attributes {stable_mosaic.version = 11 : i64} {
  func.func @_unet_block_kernel(%arg0: i32, %arg1: memref<32x64xf32, #tpu.memory_space<vmem>>, %arg2: memref<192x128xbf16, #tpu.memory_space<vmem>>, %arg3: memref<1x128xf32, #tpu.memory_space<vmem>>, %arg4: memref<384x128xbf16, #tpu.memory_space<vmem>>, %arg5: memref<1x128xf32, #tpu.memory_space<vmem>>, %arg6: memref<64x128xbf16, #tpu.memory_space<vmem>>, %arg7: memref<1x128xf32, #tpu.memory_space<vmem>>, %arg8: memref<32x128xf32, #tpu.memory_space<vmem>>) attributes {dimension_semantics = [#tpu.dimension_semantics<parallel>], iteration_bounds = array<i64: 1>, scalar_prefetch = 0 : i64, scratch_operands = 0 : i64, tpu.core_type = #tpu.core_type<tc>, window_params = [{transform_indices = @transform_0, window_bounds = array<i64: 32, 64>}, {pipeline_mode = #tpu.pipeline_mode<synchronous>, transform_indices = @transform_1, window_bounds = array<i64: 192, 128>}, {pipeline_mode = #tpu.pipeline_mode<synchronous>, transform_indices = @transform_2, window_bounds = array<i64: 1, 128>}, {pipeline_mode = #tpu.pipeline_mode<synchronous>, transform_indices = @transform_3, window_bounds = array<i64: 384, 128>}, {pipeline_mode = #tpu.pipeline_mode<synchronous>, transform_indices = @transform_4, window_bounds = array<i64: 1, 128>}, {pipeline_mode = #tpu.pipeline_mode<synchronous>, transform_indices = @transform_5, window_bounds = array<i64: 64, 128>}, {pipeline_mode = #tpu.pipeline_mode<synchronous>, transform_indices = @transform_6, window_bounds = array<i64: 1, 128>}, {transform_indices = @transform_7, window_bounds = array<i64: 32, 128>}]} {
    %c0 = arith.constant 0 : index
    %c0_0 = arith.constant 0 : index
    %0 = vector.load %arg1[%c0, %c0_0] : memref<32x64xf32, #tpu.memory_space<vmem>>, vector<32x64xf32>
    %1 = tpu.iota {dimensions = array<i32: 0>} : vector<32x1xi32>
    %c16_i32 = arith.constant 16 : i32
    %c0_i32 = arith.constant 0 : i32
    %2 = arith.cmpi eq, %c16_i32, %c0_i32 : i32
    %c1_i32 = arith.constant 1 : i32
    %3 = arith.select %2, %c1_i32, %c16_i32 : i32
    %4 = vector.broadcast %3 : i32 to vector<32x1xi32>
    %5 = arith.remsi %1, %4 : vector<32x1xi32>
    %c0_i32_1 = arith.constant 0 : i32
    %6 = vector.broadcast %c0_i32_1 : i32 to vector<32x1xi32>
    %7 = arith.cmpi ne, %5, %6 : vector<32x1xi32>
    %c0_i32_2 = arith.constant 0 : i32
    %8 = vector.broadcast %c0_i32_2 : i32 to vector<32x1xi32>
    %9 = arith.cmpi slt, %5, %8 : vector<32x1xi32>
    %c0_i32_3 = arith.constant 0 : i32
    %10 = arith.cmpi slt, %3, %c0_i32_3 : i32
    %11 = vector.broadcast %10 : i1 to vector<32x1xi1>
    %12 = vector.broadcast %11 : vector<32x1xi1> to vector<32x1xi1>
    %13 = arith.xori %9, %12 : vector<32x1xi1>
    %14 = arith.andi %13, %7 : vector<32x1xi1>
    %15 = vector.broadcast %3 : i32 to vector<32x1xi32>
    %16 = arith.addi %5, %15 : vector<32x1xi32>
    %17 = arith.select %14, %16, %5 : vector<32x1xi1>, vector<32x1xi32>
    %c2_i32 = arith.constant 2 : i32
    %18 = vector.broadcast %c2_i32 : i32 to vector<32x1xi32>
    %19 = arith.cmpi sge, %17, %18 : vector<32x1xi32>
    %c14_i32 = arith.constant 14 : i32
    %20 = vector.broadcast %c14_i32 : i32 to vector<32x1xi32>
    %21 = arith.cmpi slt, %17, %20 : vector<32x1xi32>
    %cst = arith.constant 0.000000e+00 : f32
    %22 = vector.broadcast %cst : f32 to vector<32x64xf32>
    %c2_i32_4 = arith.constant 2 : i32
    %23 = tpu.dynamic_rotate %0 by %c2_i32_4 dim 0 : vector<32x64xf32>, i32 -> vector<32x64xf32>
    %24 = vector.shape_cast %19 : vector<32x1xi1> to vector<32x1xi1>
    %25 = vector.broadcast %24 : vector<32x1xi1> to vector<32x64xi1>
    %26 = arith.select %25, %23, %22 : vector<32x64xi1>, vector<32x64xf32>
    %c30_i32 = arith.constant 30 : i32
    %27 = tpu.dynamic_rotate %0 by %c30_i32 dim 0 : vector<32x64xf32>, i32 -> vector<32x64xf32>
    %28 = vector.shape_cast %21 : vector<32x1xi1> to vector<32x1xi1>
    %29 = vector.broadcast %28 : vector<32x1xi1> to vector<32x64xi1>
    %30 = arith.select %29, %27, %22 : vector<32x64xi1>, vector<32x64xf32>
    %31 = tpu.concatenate %26, %0, %30 in 1 : vector<32x64xf32>, vector<32x64xf32>, vector<32x64xf32> -> vector<32x192xf32>
    %32 = arith.truncf %31 : vector<32x192xf32> to vector<32x192xbf16>
    %c0_5 = arith.constant 0 : index
    %c0_6 = arith.constant 0 : index
    %33 = vector.load %arg2[%c0_5, %c0_6] : memref<192x128xbf16, #tpu.memory_space<vmem>>, vector<192x128xbf16>
    %cst_7 = arith.constant dense<0.000000e+00> : vector<32x128xf32>
    %34 = tpu.matmul %32, %33, %cst_7 {dimension_numbers = #tpu.dot_dimension_numbers<[1], [0], [0], [1], [0, 0, 1, 1], [], []>} : vector<32x192xbf16>, vector<192x128xbf16>, vector<32x128xf32> -> vector<32x128xf32>
    %c0_8 = arith.constant 0 : index
    %c0_9 = arith.constant 0 : index
    %35 = vector.load %arg3[%c0_8, %c0_9] : memref<1x128xf32, #tpu.memory_space<vmem>>, vector<1x128xf32>
    %36 = vector.broadcast %35 : vector<1x128xf32> to vector<32x128xf32>
    %37 = arith.addf %34, %36 : vector<32x128xf32>
    %cst_10 = arith.constant 0.000000e+00 : f32
    %38 = vector.broadcast %cst_10 : f32 to vector<32x128xf32>
    %39 = arith.cmpf oge, %37, %38 : vector<32x128xf32>
    %cst_11 = arith.constant 1.000000e-01 : f32
    %40 = vector.broadcast %cst_11 : f32 to vector<32x128xf32>
    %41 = arith.mulf %40, %37 : vector<32x128xf32>
    %42 = arith.select %39, %37, %41 : vector<32x128xi1>, vector<32x128xf32>
    %cst_12 = arith.constant 0.000000e+00 : f32
    %43 = vector.broadcast %cst_12 : f32 to vector<32x128xf32>
    %c2_i32_13 = arith.constant 2 : i32
    %44 = tpu.dynamic_rotate %42 by %c2_i32_13 dim 0 : vector<32x128xf32>, i32 -> vector<32x128xf32>
    %45 = vector.shape_cast %19 : vector<32x1xi1> to vector<32x1xi1>
    %46 = vector.broadcast %45 : vector<32x1xi1> to vector<32x128xi1>
    %47 = arith.select %46, %44, %43 : vector<32x128xi1>, vector<32x128xf32>
    %c30_i32_14 = arith.constant 30 : i32
    %48 = tpu.dynamic_rotate %42 by %c30_i32_14 dim 0 : vector<32x128xf32>, i32 -> vector<32x128xf32>
    %49 = vector.shape_cast %21 : vector<32x1xi1> to vector<32x1xi1>
    %50 = vector.broadcast %49 : vector<32x1xi1> to vector<32x128xi1>
    %51 = arith.select %50, %48, %43 : vector<32x128xi1>, vector<32x128xf32>
    %52 = tpu.concatenate %47, %42, %51 in 1 : vector<32x128xf32>, vector<32x128xf32>, vector<32x128xf32> -> vector<32x384xf32>
    %53 = arith.truncf %52 : vector<32x384xf32> to vector<32x384xbf16>
    %c0_15 = arith.constant 0 : index
    %c0_16 = arith.constant 0 : index
    %54 = vector.load %arg4[%c0_15, %c0_16] : memref<384x128xbf16, #tpu.memory_space<vmem>>, vector<384x128xbf16>
    %cst_17 = arith.constant dense<0.000000e+00> : vector<32x128xf32>
    %55 = tpu.matmul %53, %54, %cst_17 {dimension_numbers = #tpu.dot_dimension_numbers<[1], [0], [0], [1], [0, 0, 1, 1], [], []>} : vector<32x384xbf16>, vector<384x128xbf16>, vector<32x128xf32> -> vector<32x128xf32>
    %c0_18 = arith.constant 0 : index
    %c0_19 = arith.constant 0 : index
    %56 = vector.load %arg5[%c0_18, %c0_19] : memref<1x128xf32, #tpu.memory_space<vmem>>, vector<1x128xf32>
    %57 = vector.broadcast %56 : vector<1x128xf32> to vector<32x128xf32>
    %58 = arith.addf %55, %57 : vector<32x128xf32>
    %cst_20 = arith.constant 0.000000e+00 : f32
    %59 = vector.broadcast %cst_20 : f32 to vector<32x128xf32>
    %60 = arith.cmpf oge, %58, %59 : vector<32x128xf32>
    %cst_21 = arith.constant 1.000000e-01 : f32
    %61 = vector.broadcast %cst_21 : f32 to vector<32x128xf32>
    %62 = arith.mulf %61, %58 : vector<32x128xf32>
    %63 = arith.select %60, %58, %62 : vector<32x128xi1>, vector<32x128xf32>
    %64 = arith.truncf %0 : vector<32x64xf32> to vector<32x64xbf16>
    %c0_22 = arith.constant 0 : index
    %c0_23 = arith.constant 0 : index
    %65 = vector.load %arg6[%c0_22, %c0_23] : memref<64x128xbf16, #tpu.memory_space<vmem>>, vector<64x128xbf16>
    %cst_24 = arith.constant dense<0.000000e+00> : vector<32x128xf32>
    %66 = tpu.matmul %64, %65, %cst_24 {dimension_numbers = #tpu.dot_dimension_numbers<[1], [0], [0], [1], [0, 0, 1, 1], [], []>} : vector<32x64xbf16>, vector<64x128xbf16>, vector<32x128xf32> -> vector<32x128xf32>
    %67 = arith.addf %63, %66 : vector<32x128xf32>
    %c0_25 = arith.constant 0 : index
    %c0_26 = arith.constant 0 : index
    %68 = vector.load %arg7[%c0_25, %c0_26] : memref<1x128xf32, #tpu.memory_space<vmem>>, vector<1x128xf32>
    %69 = vector.broadcast %68 : vector<1x128xf32> to vector<32x128xf32>
    %70 = arith.addf %67, %69 : vector<32x128xf32>
    %c0_27 = arith.constant 0 : index
    %c0_28 = arith.constant 0 : index
    %71 = vector.load %arg8[%c0_27, %c0_28] : memref<32x128xf32, #tpu.memory_space<vmem>>, vector<32x128xf32>
    tpu.vector_store %arg8[%c0_27, %c0_28], %70 {strides = array<i32>} : memref<32x128xf32, #tpu.memory_space<vmem>>, vector<32x128xf32>,
    return
  }
  func.func @transform_0(%arg0: i32) -> (i32, i32) {
    %c0_i32 = arith.constant 0 : i32
    %c0_i32_0 = arith.constant 0 : i32
    return %arg0, %c0_i32 : i32, i32
  }
  func.func @transform_1(%arg0: i32) -> (i32, i32) {
    %c0_i32 = arith.constant 0 : i32
    %c0_i32_0 = arith.constant 0 : i32
    %c0_i32_1 = arith.constant 0 : i32
    return %c0_i32, %c0_i32_0 : i32, i32
  }
  func.func @transform_2(%arg0: i32) -> (i32, i32) {
    %c0_i32 = arith.constant 0 : i32
    %c0_i32_0 = arith.constant 0 : i32
    %c0_i32_1 = arith.constant 0 : i32
    return %c0_i32, %c0_i32_0 : i32, i32
  }
  func.func @transform_3(%arg0: i32) -> (i32, i32) {
    %c0_i32 = arith.constant 0 : i32
    %c0_i32_0 = arith.constant 0 : i32
    %c0_i32_1 = arith.constant 0 : i32
    return %c0_i32, %c0_i32_0 : i32, i32
  }
  func.func @transform_4(%arg0: i32) -> (i32, i32) {
    %c0_i32 = arith.constant 0 : i32
    %c0_i32_0 = arith.constant 0 : i32
    %c0_i32_1 = arith.constant 0 : i32
    return %c0_i32, %c0_i32_0 : i32, i32
  }
  func.func @transform_5(%arg0: i32) -> (i32, i32) {
    %c0_i32 = arith.constant 0 : i32
    %c0_i32_0 = arith.constant 0 : i32
    %c0_i32_1 = arith.constant 0 : i32
    return %c0_i32, %c0_i32_0 : i32, i32
  }
  func.func @transform_6(%arg0: i32) -> (i32, i32) {
    %c0_i32 = arith.constant 0 : i32
    %c0_i32_0 = arith.constant 0 : i32
    %c0_i32_1 = arith.constant 0 : i32
    return %c0_i32, %c0_i32_0 : i32, i32
  }
  func.func @transform_7(%arg0: i32) -> (i32, i32) {
    %c0_i32 = arith.constant 0 : i32
    %c0_i32_0 = arith.constant 0 : i32
    return %arg0, %c0_i32 : i32, i32
  }
}

</mosaic_0001>

<bundles_post_ra>
// kernel: tpu_custom_call.1
= control target key start
LH: loop header
LB: loop body
LE: loop exit
PB: predicated region body
PF: predicated region fallthrough
CT: control target
= control target key end

     0   :  { %12 = vsyncpa [#allocation3], 0  ;;  %s1337_s0 = inlined_call_operand.hbm [shape: f32[32,64], index: 0, kind: input, shape index: {}]   ;;  %s1338_s1 = inlined_call_operand.hbm [shape: bf16[192,128], index: 1, kind: input, shape index: {}]   ;;  %s1339_s2 = inlined_call_operand.vmem [shape: f32[1,128], index: 2, kind: input, shape index: {}]   ;;  %s1340_s3 = inlined_call_operand.hbm [shape: bf16[384,128], index: 3, kind: input, shape index: {}]   ;;  %s1341_s4 = inlined_call_operand.vmem [shape: f32[1,128], index: 4, kind: input, shape index: {}]   ;;  %s1342_s5 = inlined_call_operand.hbm [shape: bf16[64,128], index: 5, kind: input, shape index: {}]   ;;  %s1343_s6 = inlined_call_operand.vmem [shape: f32[1,128], index: 6, kind: input, shape index: {}]   ;;  %s1344_s7 = inlined_call_operand.hbm [shape: f32[32,128], index: 7, kind: output, shape index: {}]  }
   0x1   :  { %13 = vsyncpa [#allocation6], 0 }
   0x2   :  { %14 = vsyncpa [#allocation9], 0  ;;  %s33_s26 = sshll.u32 %s1338_s1, 4  ;;  %s34_s26 = int_to_ptr.hbm [resolvable:$true] %s33_s26 }
   0x3   :  { %15 = vsyncpa [#allocation4], 0  ;;  %s1141_s27 = smov [#allocation5]   ;;  %s20_s8 = sshll.u32 %s1337_s0, 4  ;;  %s21_s8 = int_to_ptr.hbm [resolvable:$true] %s20_s8 }
   0x4   :  { %s35_s28 = sshll.u32 %s1141_s27, 4  ;;  %s1142_s9 = smov 64   ;;  %s36_s28 = int_to_ptr.vmem [resolvable:$true] %s35_s28 }
   0x5   :  { %s1143_s10 = smov 4   ;;  %s1144_s11 = smov [#allocation2]  }
   0x6   :  { %41 = dma.hbm_to_vmem [thread:$0]  %s34_s26, 1536, %s36_s28, [#allocation6], %s1142_s9, %s1142_s9, %s1143_s10  }
   0x7   :  { %s22_s12 = sshll.u32 %s1144_s11, 4  ;;  %s1145_s13 = smov 128   ;;  %s23_s12 = int_to_ptr.vmem [resolvable:$true] %s22_s12 }
   0x8   :  { %s1146_s1 = smov 8   ;;  %s48_s16 = sshll.u32 %s1340_s3, 4  ;;  %s49_s16 = int_to_ptr.hbm [resolvable:$true] %s48_s16 }
   0x9   :  { %28 = dma.hbm_to_vmem [thread:$0]  %s21_s8, 512, %s23_s12, [#allocation3], %s1145_s13, %s1145_s13, %s1146_s1  }
   0xa   :  { %s1147_s0 = smov [#allocation7]   ;;  %s63_s20 = sshll.u32 %s1342_s5, 4  ;;  %s64_s20 = int_to_ptr.hbm [resolvable:$true] %s63_s20 }
   0xb   :  { %s50_s17 = sshll.u32 %s1147_s0, 4  ;;  %s1148_s21 = smov [#allocation8]   ;;  %s51_s17 = int_to_ptr.vmem [resolvable:$true] %s50_s17 }
   0xc   :  { %56 = dma.hbm_to_vmem [thread:$0]  %s49_s16, 3072, %s51_s17, [#allocation6], %s1142_s9, %s1142_s9, %s1143_s10  }
   0xd   :  { %s65_s22 = sshll.u32 %s1148_s21, 4  ;;  %s66_s22 = int_to_ptr.vmem [resolvable:$true] %s65_s22 }
   0xe   :  { %71 = dma.hbm_to_vmem [thread:$0]  %s64_s20, 512, %s66_s22, [#allocation9], %s1142_s9, %s1142_s9, %s1143_s10  }
   0xf   :  { %1133 = dma.done.wait [#allocation3], 512  }
  0x10   :  { %1134 = vsyncadd [#allocation3], 4294966784 }
  0x11   :  { %1135 = dma.done.wait [#allocation6], 4608  }
  0x12   :  { %1136 = vsyncadd [#allocation6], 4294962688 }
  0x13   :  { %1137 = dma.done.wait [#allocation9], 512  }
  0x14   :  { %1138 = vsyncadd [#allocation9], 4294966784  ;;  %v1212_v0 = vld [vmem:[#allocation2] sm:$0xff]  ;;  %v1214_v1 = vld [vmem:[#allocation2 + $0x8] sm:$0xff]  ;;  %v95_v17 = vlaneseq  ;;  %vm214_vm2 = vcmask 523264   ;;  %vm1149_vm10 = vmmov 1  }
  0x15   :  { %v1000_v2 = vpack.i.bf16 %v1214_v1, %v1212_v0  ;;  %v953_v3 = vld [vmem:[#allocation5 + $0x38] sm:$0xff]  ;;  %v952_v5 = vld [vmem:[#allocation5 + $0x30] sm:$0xff]  ;;  %v951_v10 = vld [vmem:[#allocation5 + $0x28] sm:$0xff]  ;;  %v178_v19 = vrot.slane %v1214_v1, 2  ;;  %v177_v22 = vrot.slane %v1212_v0, 2  ;;  %v156_v40 = vrot.slane %v1212_v0, 6 }
  0x16   :  { %v957_v4 = vld [vmem:[#allocation5 + $0x58] sm:$0xff]  ;;  %329 = vmatpush.bf16.msra.mxu0 %v953_v3  ;;  %v1219_v6 = vld [vmem:[#allocation2 + $0x10] sm:$0xff]  ;;  %v955_v11 = vld [vmem:[#allocation5 + $0x48] sm:$0xff]  ;;  %v1226_v18 = vshrl.u32 %v95_v17, 7  ;;  %v157_v43 = vrot.slane %v1214_v1, 6  ;;  %s755_s28 = sshll.u32 %s1344_s7, 4  ;;  %s756_s28 = int_to_ptr.hbm [resolvable:$true] %s755_s28 }
  0x17   :  { %1001 = vrot.lane.b32.xlu0 %v1000_v2, %s1142_s9  ;;  %v1221_v7 = vld [vmem:[#allocation2 + $0x18] sm:$0xff]  ;;  %352 = vmatpush.bf16.msra.mxu1 %v957_v4  ;;  %v956_v8 = vld [vmem:[#allocation5 + $0x50] sm:$0xff]  ;;  %v950_v12 = vld [vmem:[#allocation5 + $0x20] sm:$0xff]  ;;  %v179_v20 = vrot.slane %v1219_v6, 2  ;;  %v158_v56 = vrot.slane %v1219_v6, 6 }
  0x18   :  { %v1005_v9 = vpack.i.bf16 %v1221_v7, %v1219_v6  ;;  %v954_v13 = vld [vmem:[#allocation5 + $0x40] sm:$0xff]  ;;  %v949_v14 = vld [vmem:[#allocation5 + $0x18] sm:$0xff]  ;;  %v948_v15 = vld [vmem:[#allocation5 + $0x10] sm:$0xff]  ;;  %v97_v21 = vadd.s32 8, %v1226_v18  ;;  %vm181_vm0 = vcmp.lt.s32.totalorder %v1226_v18, 6  ;;  %v99_v30 = vadd.s32 24, %v1226_v18 }
  0x19   :  { %v947_v16 = vld [vmem:[#allocation5 + $0x8] sm:$0xff]  ;;  %v183_v25 = vsel %vm181_vm0, %v178_v19, %v179_v20  ;;  %v184_v26 = vsel %vm181_vm0, %v177_v22, %v178_v19  ;;  %v946_v29 = vld [vmem:[#allocation5] sm:$0xff]  ;;  %v180_v31 = vrot.slane %v1221_v7, 2  ;;  %v973_v38 = vld [vmem:[#allocation7 + $0x78] sm:$0xff]  ;;  %v159_v41 = vrot.slane %v1221_v7, 6 }
  0x1a   :  { %330 = vmatpush.bf16.msra.mxu0 %v952_v5  ;;  %v111_v23 = vand.u32 15, %v97_v21  ;;  %v125_v32 = vand.u32 15, %v99_v30  ;;  %624 = vmatpush.bf16.msra.mxu3 %v973_v38  ;;  %v972_v39 = vld [vmem:[#allocation7 + $0x70] sm:$0xff]  ;;  %v104_v42 = vand.u32 15, %v1226_v18  ;;  %vm160_vm4 = vcmp.lt.s32.totalorder %v1226_v18, 2  ;;  %v971_v5 = vld [vmem:[#allocation7 + $0x68] sm:$0xff] }
  0x1b   :  { %353 = vmatpush.bf16.msra.mxu1 %v956_v8  ;;  %v182_v33 = vsel %vm181_vm0, %v179_v20, %v180_v31  ;;  %v185_v34 = vsel %vm181_vm0, %v180_v31, %v177_v22  ;;  %v164_v45 = vsel %vm160_vm4, %v159_v41, %v156_v40  ;;  %v163_v47 = vsel %vm160_vm4, %v156_v40, %v157_v43  ;;  %v981_v8 = vld [vmem:[#allocation7 + $0xb8] sm:$0xff]  ;;  %v967_v17 = vld [vmem:[#allocation7 + $0x48] sm:$0xff]  ;;  %v966_v21 = vld [vmem:[#allocation7 + $0x40] sm:$0xff] }
  0x1c   :  { %vm1233_vm1 = vcmp.lt.s32.totalorder %v111_v23, 14  ;;  %vm1250_vm3 = vcmp.lt.s32.totalorder %v125_v32, 14  ;;  %vm1262_vm5 = vcmp.ge.s32.totalorder %v104_v42, 2  ;;  %v98_v51 = vadd.s32 16, %v1226_v18  ;;  %v963_v19 = vld [vmem:[#allocation7 + $0x28] sm:$0xff]  ;;  %v977_v20 = vld [vmem:[#allocation7 + $0x98] sm:$0xff] }
  0x1d   :  { %v195_v27 = vsel %vm1233_vm1, %v183_v25, 0.0  ;;  %v197_v36 = vsel %vm1250_vm3, %v185_v34, 0.0  ;;  %v173_v48 = vsel %vm1262_vm5, %v164_v45, 0.0  ;;  %v162_v59 = vsel %vm160_vm4, %v157_v43, %v158_v56  ;;  %v962_v22 = vld [vmem:[#allocation7 + $0x20] sm:$0xff]  ;;  %v976_v23 = vld [vmem:[#allocation7 + $0x90] sm:$0xff]  ;;  %v961_v25 = vld [vmem:[#allocation7 + $0x18] sm:$0xff] }
  0x1e   :  { %331 = vmatpush.bf16.msra.mxu0 %v951_v10  ;;  %v220_v28 = vpack.c.bf16 %v195_v27, %v184_v26  ;;  %v222_v37 = vpack.c.bf16 %v197_v36, %v182_v33  ;;  %625 = vmatpush.bf16.msra.mxu3 %v972_v39  ;;  %v118_v55 = vand.u32 15, %v98_v51  ;;  %v161_v62 = vsel %vm160_vm4, %v158_v56, %v159_v41  ;;  %v980_v10 = vld [vmem:[#allocation7 + $0xb0] sm:$0xff]  ;;  %v975_v26 = vld [vmem:[#allocation7 + $0x88] sm:$0xff]  ;;  %v958_v31 = vld [vmem:[#allocation7] sm:$0xff] }
  0x1f   :  { %1006 = vrot.lane.b32.xlu0 %v1005_v9, %s1142_s9  ;;  %354 = vmatpush.bf16.msra.mxu1 %v955_v11  ;;  %v970_v9 = vld [vmem:[#allocation7 + $0x60] sm:$0xff]  ;;  %v969_v11 = vld [vmem:[#allocation7 + $0x58] sm:$0xff]  ;;  %v960_v27 = vld [vmem:[#allocation7 + $0x10] sm:$0xff] }
  0x20   :  { %vm1276_vm6 = vcmp.ge.s32.totalorder %v118_v55, 2  ;;  %v959_v30 = vld [vmem:[#allocation7 + $0x8] sm:$0xff]  ;;  %v1010_v32 = vld [vmem:[%s1339_s2] ss:$0 sm:$0xff]  ;;  %v985_v36 = vld [vmem:[#allocation8 + $0x18] sm:$0xff] }
  0x21   :  { %v175_v63 = vsel %vm1276_vm6, %v162_v59, 0.0  ;;  %v983_v45 = vld [vmem:[#allocation8 + $0x8] sm:$0xff]  ;;  %vm922_vm11 = vmpackc.low %vm1233_vm1, %vm1149_vm10 }
  0x22   :  { %332 = vmatpush.bf16.msra.mxu0 %v950_v12  ;;  %626 = vmatpush.bf16.msra.mxu3 %v971_v5  ;;  %v965_v12 = vld [vmem:[#allocation7 + $0x38] sm:$0xff]  ;;  %vm916_vm13 = vmpackc.low %vm1149_vm10, %vm1262_vm5 }
  0x23   :  { %355 = vmatpush.bf16.msra.mxu1 %v954_v13  ;;  %v979_v13 = vld [vmem:[#allocation7 + $0xa8] sm:$0xff]  ;;  %605 = vmatpush.bf16.msra.mxu2 %v965_v12  ;;  %vm925_vm14 = vmpackc.low %vm1250_vm3, %vm1149_vm10 }
  0x24   :  { %vm919_vm15 = vmpackc.low %vm1149_vm10, %vm1276_vm6 }
  0x26   :  { %333 = vmatpush.bf16.msra.mxu0 %v949_v14  ;;  %818 = vmatmul.msk.bf16.vlgmr.msra.gmra.mxu1 %vm214_vm2, %v220_v28  ;;  %v968_v14 = vld [vmem:[#allocation7 + $0x50] sm:$0xff]  ;;  %v974_v28 = vld [vmem:[#allocation7 + $0x80] sm:$0xff] }
  0x27   :  { %643 = vmatpush.bf16.msrb.mxu1 %v981_v8  ;;  %627 = vmatpush.bf16.msra.mxu3 %v970_v9 }
  0x2a   :  { %334 = vmatpush.bf16.msra.mxu0 %v948_v15  ;;  %v964_v15 = vld [vmem:[#allocation7 + $0x30] sm:$0xff] }
  0x2b   :  { %644 = vmatpush.bf16.msrb.mxu1 %v980_v10  ;;  %628 = vmatpush.bf16.msra.mxu3 %v969_v11 }
  0x2c   :  { %606 = vmatpush.bf16.msra.mxu2 %v964_v15 }
  0x2e   :  { %335 = vmatpush.bf16.msra.mxu0 %v947_v16  ;;  %v978_v16 = vld [vmem:[#allocation7 + $0xa0] sm:$0xff] }
  0x2f   :  { %645 = vmatpush.bf16.msrb.mxu1 %v979_v13  ;;  %629 = vmatpush.bf16.msra.mxu3 %v968_v14 }
  0x30   :  { %607 = vmatpush.bf16.msra.mxu2 %v963_v19 }
  0x32   :  { %336 = vmatpush.bf16.msra.mxu0 %v946_v29 }
  0x33   :  { %646 = vmatpush.bf16.msrb.mxu1 %v978_v16  ;;  %630 = vmatpush.bf16.msra.mxu3 %v967_v17 }
  0x34   :  { %608 = vmatpush.bf16.msra.mxu2 %v962_v22 }
  0x36   :  { %819 = vmatmul.msk.bf16.gmra.mxu1 %vm214_vm2, %v222_v37  ;;  %718 = vmatpush.bf16.msrb.mxu0 %v985_v36  ;;  %v984_v37 = vld [vmem:[#allocation8 + $0x10] sm:$0xff] }
  0x37   :  { %647 = vmatpush.bf16.msrb.mxu1 %v977_v20  ;;  %631 = vmatpush.bf16.msra.mxu3 %v966_v21 }
  0x38   :  { %609 = vmatpush.bf16.msra.mxu2 %v961_v25  ;;  %v1011_v25 = vld [vmem:[%s1341_s4] ss:$0 sm:$0xff]  ;;  %s1150_s4 = smov [#allocation10]  }
  0x3a   :  { %719 = vmatpush.bf16.msrb.mxu0 %v984_v37 }
  0x3b   :  { %648 = vmatpush.bf16.msrb.mxu1 %v976_v23  ;;  %v675_v23 = vpack.c.bf16 %v1221_v7, %v1219_v6  ;;  %v1012_v6 = vld [vmem:[%s1343_s6] ss:$0 sm:$0xff]  ;;  %s753_s6 = sshll.u32 %s1150_s4, 4  ;;  %s754_s6 = int_to_ptr.vmem [resolvable:$true] %s753_s6 }
  0x3c   :  { %610 = vmatpush.bf16.msra.mxu2 %v960_v27 }
  0x3e   :  { %720 = vmatpush.bf16.msrb.mxu0 %v983_v45 }
  0x3f   :  { %649 = vmatpush.bf16.msrb.mxu1 %v975_v26 }
  0x40   :  { %611 = vmatpush.bf16.msra.mxu2 %v959_v30 }
  0x43   :  { %650 = vmatpush.bf16.msrb.mxu1 %v974_v28 }
  0x44   :  { %612 = vmatpush.bf16.msra.mxu2 %v958_v31 }
  0x48   :  { %986 = vmatpush.bf16.msrb.mxu2 %v985_v36 }
  0x4c   :  { %987 = vmatpush.bf16.msrb.mxu2 %v984_v37 }
  0x50   :  { %988 = vmatpush.bf16.msrb.mxu2 %v983_v45 }
  0x89   :  { %v1002_v46 = vpop.permute.xlu0 %1001 }
  0x8a   :  { %v1004_v49 = vunpack.i.h.bf16 %v1002_v46  ;;  %v1003_v50 = vunpack.i.l.bf16 %v1002_v46 }
  0x8c   :  { %v215_v52 = vsel %vm214_vm2, %v173_v48, %v1003_v50  ;;  %v216_v53 = vsel %vm214_vm2, %v163_v47, %v1004_v49  ;;  %v982_v47 = vld [vmem:[#allocation8] sm:$0xff] }
  0x8d   :  { %v219_v54 = vpack.c.bf16 %v216_v53, %v215_v52  ;;  %v674_v53 = vpack.c.bf16 %v1214_v1, %v1212_v0  ;;  %721 = vmatpush.bf16.msrb.mxu0 %v982_v47  ;;  %989 = vmatpush.bf16.msrb.mxu2 %v982_v47 }
  0x8f   :  { %337 = vmatmul.bf16.vlgmr.msra.gmra.mxu0 %v219_v54 }
  0x91   :  { %v1007_v57 = vpop.permute.xlu0 %1006 }
  0x92   :  { %v1009_v60 = vunpack.i.h.bf16 %v1007_v57  ;;  %v1008_v61 = vunpack.i.l.bf16 %v1007_v57 }
  0x94   :  { %v217_v2 = vsel %vm214_vm2, %v175_v63, %v1008_v61  ;;  %v218_v3 = vsel %vm214_vm2, %v161_v62, %v1009_v60 }
  0x95   :  { %v221_v4 = vpack.c.bf16 %v218_v3, %v217_v2 }
  0x9f   :  { %342 = vmatmul.bf16.gmra.mxu0 %v221_v4 }
  0xa3   :  { %v357_v29 = vpop.f32.mrf.mxu1 }
  0xab   :  { %v359_v38 = vpop.f32.mrf.mxu1 }
  0xaf   :  { %944 = vmatmul.msk.bf16.vlgmr.msrb.gmra.mxu0 %vm214_vm2, %v674_v53 }
  0xb3   :  { %v362_v50 = vpop.f32.mrf.mxu1 }
  0xbb   :  { %v364_v2 = vpop.f32.mrf.mxu1 }
 0x10c   :  { %v338_v33 = vpop.f32.mrf.mxu0 }
 0x10d   :  { %v339_v34 = vadd.f32 %v1010_v32, %v338_v33 }
 0x10f   :  { %v358_v39 = vadd.f32 %v357_v29, %v339_v34 }
 0x111   :  { %v371_v42 = vmul.f32 0.1, %v358_v39  ;;  %vm367_vm7 = vcmp.ge.f32.partialorder %v358_v39, 0.0 }
 0x113   :  { %v375_v48 = vsel %vm367_vm7, %v358_v39, %v371_v42 }
 0x114   :  { %v340_v40 = vpop.f32.mrf.mxu0  ;;  %v391_v61 = vrot.slane %v375_v48, 2  ;;  %v379_v10 = vrot.slane %v375_v48, 6 }
 0x115   :  { %v341_v41 = vadd.f32 %v1010_v32, %v340_v40 }
 0x117   :  { %v360_v43 = vadd.f32 %v359_v38, %v341_v41 }
 0x119   :  { %v372_v46 = vmul.f32 0.1, %v360_v43  ;;  %vm368_vm8 = vcmp.ge.f32.partialorder %v360_v43, 0.0 }
 0x11b   :  { %v376_v49 = vsel %vm368_vm8, %v360_v43, %v372_v46 }
 0x11c   :  { %v343_v51 = vpop.f32.mrf.mxu0  ;;  %v404_v52 = vpack.c.bf16 %v376_v49, %v375_v48  ;;  %v392_v57 = vrot.slane %v376_v49, 2  ;;  %v380_v8 = vrot.slane %v376_v49, 6 }
 0x11d   :  { %v344_v54 = vadd.f32 %v1010_v32, %v343_v51 }
 0x11e   :  { %632 = vmatmul.bf16.vlgmr.msra.gmra.mxu3 %v404_v52  ;;  %v397_v0 = vsel %vm181_vm0, %v391_v61, %v392_v57  ;;  %v385_v13 = vsel %vm160_vm4, %v379_v10, %v380_v8 }
 0x11f   :  { %v363_v55 = vadd.f32 %v362_v50, %v344_v54 }
 0x121   :  { %vm369_vm9 = vcmp.ge.f32.partialorder %v363_v55, 0.0  ;;  %v373_v56 = vmul.f32 0.1, %v363_v55 }
 0x123   :  { %v377_v59 = vsel %vm369_vm9, %v363_v55, %v373_v56 }
 0x124   :  { %v393_v60 = vrot.slane %v377_v59, 2  ;;  %v345_v62 = vpop.f32.mrf.mxu0  ;;  %v381_v20 = vrot.slane %v377_v59, 6 }
 0x125   :  { %v346_v63 = vadd.f32 %v1010_v32, %v345_v62 }
 0x126   :  { %v396_v3 = vsel %vm181_vm0, %v392_v57, %v393_v60  ;;  %v384_v21 = vsel %vm160_vm4, %v380_v8, %v381_v20 }
 0x127   :  { %v365_v1 = vadd.f32 %v364_v2, %v346_v63  ;;  %v923_v4 = vpack.c.bf16 %v396_v3, %v397_v0 }
 0x129   :  { %v374_v5 = vmul.f32 0.1, %v365_v1  ;;  %924 = vmatmul.msk.bf16.vlgmr.msrb.gmra.mxu1 %vm922_vm11, %v923_v4  ;;  %vm370_vm12 = vcmp.ge.f32.partialorder %v365_v1, 0.0 }
 0x12b   :  { %v378_v9 = vsel %vm370_vm12, %v365_v1, %v374_v5 }
 0x12c   :  { %v382_v11 = vrot.slane %v378_v9, 6  ;;  %v407_v12 = vpack.c.bf16 %v378_v9, %v377_v59  ;;  %v394_v15 = vrot.slane %v378_v9, 2  ;;  %v723_v58 = vpop.f32.mrf.mxu0 }
 0x12e   :  { %637 = vmatmul.bf16.gmra.mxu3 %v407_v12  ;;  %v386_v14 = vsel %vm160_vm4, %v382_v11, %v379_v10  ;;  %v395_v16 = vsel %vm181_vm0, %v393_v60, %v394_v15  ;;  %v398_v17 = vsel %vm181_vm0, %v394_v15, %v391_v61  ;;  %v383_v44 = vsel %vm160_vm4, %v381_v20, %v382_v11 }
 0x12f   :  { %v917_v24 = vpack.c.bf16 %v385_v13, %v386_v14  ;;  %v926_v19 = vpack.c.bf16 %v398_v17, %v395_v16  ;;  %v920_v22 = vpack.c.bf16 %v383_v44, %v384_v21 }
 0x131   :  { %918 = vmatmul.msk.bf16.vlgmr.msra.gmra.mxu2 %vm916_vm13, %v917_v24 }
 0x134   :  { %v725_v41 = vpop.f32.mrf.mxu0 }
 0x139   :  { %927 = vmatmul.msk.bf16.gmra.mxu1 %vm925_vm14, %v926_v19 }
 0x141   :  { %921 = vmatmul.msk.bf16.gmra.mxu2 %vm919_vm15, %v920_v22 }
 0x151   :  { %945 = vmatmul.msk.bf16.vlgmr.msrb.gmra.mxu2 %vm214_vm2, %v675_v23 }
 0x1a1   :  { %v633_v35 = vpop.f32.mrf.mxu3 }
 0x1a6   :  { %v652_v27 = vpop.f32.mrf.mxu1 }
 0x1a9   :  { %v635_v30 = vpop.f32.mrf.mxu3 }
 0x1ae   :  { %v654_v36 = vpop.f32.mrf.mxu1 }
 0x1b1   :  { %v638_v43 = vpop.f32.mrf.mxu3 }
 0x1b4   :  { %v614_v26 = vpop.f32.mrf.mxu2 }
 0x1b5   :  { %v615_v18 = vadd.f32 %v1011_v25, %v614_v26 }
 0x1b6   :  { %v657_v50 = vpop.f32.mrf.mxu1 }
 0x1b7   :  { %v634_v28 = vadd.f32 %v633_v35, %v615_v18 }
 0x1b9   :  { %v653_v29 = vadd.f32 %v652_v27, %v634_v28  ;;  %v640_v54 = vpop.f32.mrf.mxu3 }
 0x1bb   :  { %vm662_vm0 = vcmp.ge.f32.partialorder %v653_v29, 0.0  ;;  %v666_v31 = vmul.f32 0.1, %v653_v29 }
 0x1bc   :  { %v616_v32 = vpop.f32.mrf.mxu2 }
 0x1bd   :  { %v617_v7 = vadd.f32 %v1011_v25, %v616_v32  ;;  %v670_v33 = vsel %vm662_vm0, %v653_v29, %v666_v31 }
 0x1be   :  { %v733_v34 = vadd.f32 %v723_v58, %v670_v33  ;;  %v659_v57 = vpop.f32.mrf.mxu1 }
 0x1bf   :  { %v636_v37 = vadd.f32 %v635_v30, %v617_v7 }
 0x1c0   :  { %v741_v38 = vadd.f32 %v1012_v6, %v733_v34 }
 0x1c1   :  { %v655_v39 = vadd.f32 %v654_v36, %v636_v37 }
 0x1c2   :  { %745 = vst [vmem:[#allocation10] sm:$0xff] %v741_v38 }
 0x1c3   :  { %vm663_vm1 = vcmp.ge.f32.partialorder %v655_v39, 0.0  ;;  %v667_v40 = vmul.f32 0.1, %v655_v39 }
 0x1c4   :  { %v619_v42 = vpop.f32.mrf.mxu2 }
 0x1c5   :  { %v620_v45 = vadd.f32 %v1011_v25, %v619_v42  ;;  %v671_v46 = vsel %vm663_vm1, %v655_v39, %v667_v40 }
 0x1c6   :  { %v734_v47 = vadd.f32 %v725_v41, %v671_v46 }
 0x1c7   :  { %v639_v48 = vadd.f32 %v638_v43, %v620_v45 }
 0x1c8   :  { %v742_v49 = vadd.f32 %v1012_v6, %v734_v47 }
 0x1c9   :  { %v658_v51 = vadd.f32 %v657_v50, %v639_v48 }
 0x1ca   :  { %746 = vst [vmem:[#allocation10 + $0x8] sm:$0xff] %v742_v49 }
 0x1cb   :  { %v668_v56 = vmul.f32 0.1, %v658_v51  ;;  %vm664_vm2 = vcmp.ge.f32.partialorder %v658_v51, 0.0 }
 0x1cc   :  { %v621_v52 = vpop.f32.mrf.mxu2 }
 0x1cd   :  { %v622_v53 = vadd.f32 %v1011_v25, %v621_v52  ;;  %v672_v60 = vsel %vm664_vm2, %v658_v51, %v668_v56 }
 0x1cf   :  { %v641_v55 = vadd.f32 %v640_v54, %v622_v53 }
 0x1d1   :  { %v660_v59 = vadd.f32 %v659_v57, %v641_v55 }
 0x1d3   :  { %v669_v2 = vmul.f32 0.1, %v660_v59  ;;  %vm665_vm3 = vcmp.ge.f32.partialorder %v660_v59, 0.0 }
 0x1d4   :  { %v728_v61 = vpop.f32.mrf.mxu2 }
 0x1d5   :  { %v735_v62 = vadd.f32 %v728_v61, %v672_v60  ;;  %v673_v3 = vsel %vm665_vm3, %v660_v59, %v669_v2 }
 0x1d7   :  { %v743_v63 = vadd.f32 %v1012_v6, %v735_v62 }
 0x1d9   :  { %747 = vst [vmem:[#allocation10 + $0x10] sm:$0xff] %v743_v63 }
 0x1dc   :  { %v730_v0 = vpop.f32.mrf.mxu2 }
 0x1dd   :  { %v736_v1 = vadd.f32 %v730_v0, %v673_v3 }
 0x1df   :  { %v744_v4 = vadd.f32 %v1012_v6, %v736_v1 }
 0x1e1   :  { %748 = vst [vmem:[#allocation10 + $0x18] sm:$0xff] %v744_v4 }
 0x1e2   :  { %761 = dma.vmem_to_hbm [thread:$0]  %s754_s6, 512, %s756_s28, [#allocation4], %s1145_s13, %s1145_s13, %s1146_s1  }
 0x1e3   :  { %1139 = dma.done.wait [#allocation4], 512  }
 0x1e4   :  { %1140 = vsyncadd [#allocation4], 4294966784 }
 0x1e5   :  { %766 = vsyncpa [#allocation3], 1 }
 0x1e6   :  { %767 = vsyncpa [#allocation6], 1 }
 0x1e7   :  { %768 = vsyncpa [#allocation9], 1 }
 0x1e8   :  { %769 = vsyncpa [#allocation4], 1 }

</bundles_post_ra>
